<compile_context>
chip_gen: v5e
topology: v5e:2x2
jax: 0.10.0
libtpu: 0.0.40
codegen_flags: <defaults>
</compile_context>

<pallas_src>
import jax
import jax.numpy as jnp
from jax.experimental import pallas as pl
from jax.experimental.pallas import tpu as pltpu


def _same_pad_kernel(x_ref, o_ref):
    # x_ref: (tR, in_tT) VMEM tile; o_ref: (tR, tT) with tT <= in_tT.
    # Shapes are static, so this branch resolves at trace time.
    n = o_ref.shape[-1]
    if x_ref.shape[-1] == n:
        o_ref[...] = x_ref[...]          # plain full-tile copy (tiled path)
    else:
        o_ref[...] = x_ref[:, :n]        # aligned prefix slice (small-T path)


def same_pad_forward(x, kernel_size, causal=False):
    """Pallas TPU forward of SamePad for x of shape [B, C, T]."""
    if causal:
        remove = kernel_size - 1
    else:
        remove = 1 if kernel_size % 2 == 0 else 0

    if remove <= 0:
        # PyTorch returns the input unchanged (no copy needed).
        return x

    B, C, T = x.shape
    t_out = T - remove
    if t_out <= 0:
        # PyTorch would return an empty time axis; no kernel needed.
        return x[:, :, :0]

    # Flatten (B, C) into a single row axis -> lane-dense 2D slab (free view).
    R = B * C
    x2 = x.reshape(R, T)
    itemsize = jnp.dtype(x.dtype).itemsize

    # ---- tile selection ----------------------------------------------------
    if t_out >= 128:
        # Lane tile: a multiple of 128 shared by input and output blocks.
        # Interior tiles never touch the removed tail; the final (possibly
        # partial) output tile is write-masked by Pallas, and any input read
        # past T is padded and ignored.
        tT = max(128, (min(t_out, 2048) // 128) * 128)
        in_tT = tT
    else:
        # Tiny time axis: full-extent lane blocks (always legal); the kernel
        # does the aligned prefix slice.  Extra read traffic is only `remove`
        # columns per row.
        tT = t_out
        in_tT = T

    # Row tile: largest multiple of 8 keeping double-buffered in+out blocks
    # well inside the scoped-VMEM budget on all generations (v7x included).
    budget = 8 * 1024 * 1024
    bytes_per_row = (in_tT + tT) * itemsize * 2  # x2 for double buffering
    rows_fit = max(8, budget // bytes_per_row)
    if R <= rows_fit:
        tR = R  # full extent is always a legal block dim
    else:
        tR = max(8, min(1024, (rows_fit // 8) * 8))

    grid = (pl.cdiv(R, tR), pl.cdiv(t_out, tT))

    out2 = pl.pallas_call(
        _same_pad_kernel,
        out_shape=jax.ShapeDtypeStruct((R, t_out), x.dtype),
        grid=grid,
        in_specs=[pl.BlockSpec((tR, in_tT), lambda r, c: (r, c))],
        out_specs=pl.BlockSpec((tR, tT), lambda r, c: (r, c)),
        compiler_params=pltpu.CompilerParams(
            dimension_semantics=("parallel", "parallel"),
            vmem_limit_bytes=32 * 1024 * 1024,
        ),
        cost_estimate=pl.CostEstimate(
            flops=0,
            transcendentals=0,
            bytes_accessed=(R * T + R * t_out) * itemsize,
        ),
    )(x2)

    return out2.reshape(B, C, t_out)


if __name__ == "__main__":
    key = jax.random.PRNGKey(0)

    # --- small shapes matching the module's conv1d layout [B, C, T] ---------
    B, C, T = 2, 4, 16
    x = jax.random.normal(key, (B, C, T), dtype=jnp.float32)

    # Even kernel_size, non-causal -> remove = 1
    out = same_pad_forward(x, kernel_size=4, causal=False)
    out = jax.block_until_ready(out)
    ref = x[:, :, :-1]
    assert out.shape == ref.shape
    assert jnp.array_equal(out, ref), "mismatch vs reference (even, non-causal)"

    # Causal -> remove = kernel_size - 1 = 2
    out_c = same_pad_forward(x, kernel_size=3, causal=True)
    out_c = jax.block_until_ready(out_c)
    ref_c = x[:, :, :-2]
    assert out_c.shape == ref_c.shape
    assert jnp.array_equal(out_c, ref_c), "mismatch vs reference (causal)"

    # Odd kernel_size, non-causal -> remove = 0 (identity, returns x)
    out0 = same_pad_forward(x, kernel_size=3, causal=False)
    assert out0.shape == x.shape
    assert jnp.array_equal(out0, x), "mismatch vs reference (no-op)"

    # Moderate T exercising the 128-multiple lane-tiled path with a masked
    # edge tile (t_out = 383, tT = 256, 2 column tiles).
    key2 = jax.random.PRNGKey(0)
    x_big = jax.random.normal(key2, (2, 4, 384), dtype=jnp.float32)
    out_big = same_pad_forward(x_big, kernel_size=2, causal=False)
    out_big = jax.block_until_ready(out_big)
    ref_big = x_big[:, :, :-1]
    assert out_big.shape == ref_big.shape
    assert jnp.array_equal(out_big, ref_big), "mismatch vs reference (tiled)"

    print("KERNEL_OK")
</pallas_src>

<mosaic_0001>
module attributes {stable_mosaic.version = 11 : i64} {
  func.func @_same_pad_kernel(%arg0: i32, %arg1: i32, %arg2: memref<8x16xf32, #tpu.memory_space<vmem>>, %arg3: memref<8x15xf32, #tpu.memory_space<vmem>>) attributes {dimension_semantics = [#tpu.dimension_semantics<parallel>, #tpu.dimension_semantics<parallel>], iteration_bounds = array<i64: 1, 1>, scalar_prefetch = 0 : i64, scratch_operands = 0 : i64, tpu.core_type = #tpu.core_type<tc>, window_params = [{transform_indices = @transform_0, window_bounds = array<i64: 8, 16>}, {transform_indices = @transform_1, window_bounds = array<i64: 8, 15>}]} {
    %c0 = arith.constant 0 : index
    %c0_0 = arith.constant 0 : index
    %0 = vector.load %arg2[%c0, %c0_0] : memref<8x16xf32, #tpu.memory_space<vmem>>, vector<8x15xf32>
    %c0_1 = arith.constant 0 : index
    %c0_2 = arith.constant 0 : index
    %1 = vector.load %arg3[%c0_1, %c0_2] : memref<8x15xf32, #tpu.memory_space<vmem>>, vector<8x15xf32>
    tpu.vector_store %arg3[%c0_1, %c0_2], %0 {strides = array<i32>} : memref<8x15xf32, #tpu.memory_space<vmem>>, vector<8x15xf32>,
    return
  }
  func.func @transform_0(%arg0: i32, %arg1: i32) -> (i32, i32) {
    %c0_i32 = arith.constant 0 : i32
    return %arg0, %arg1 : i32, i32
  }
  func.func @transform_1(%arg0: i32, %arg1: i32) -> (i32, i32) {
    %c0_i32 = arith.constant 0 : i32
    return %arg0, %arg1 : i32, i32
  }
}

</mosaic_0001>

<bundles_post_ra>
// kernel: tpu_custom_call.1
= control target key start
LH: loop header
LB: loop body
LE: loop exit
PB: predicated region body
PF: predicated region fallthrough
CT: control target
= control target key end

     0   :  { %6 = vsyncpa [#allocation3], 0  ;;  %s115_s0 = inlined_call_operand.hbm [shape: f32[8,16], index: 0, kind: input, shape index: {}]   ;;  %s116_s1 = inlined_call_operand.hbm [shape: f32[8,15], index: 1, kind: output, shape index: {}]  }
   0x1   :  { %7 = vsyncpa [#allocation4], 0  ;;  %s13_s8 = sshll.u32 %s115_s0, 4  ;;  %s97_s9 = smov [#allocation2]   ;;  %s14_s8 = int_to_ptr.hbm [resolvable:$true] %s13_s8 }
   0x2   :  { %s15_s10 = sshll.u32 %s97_s9, 4  ;;  %s16_s10 = int_to_ptr.vmem [resolvable:$true] %s15_s10 }
   0x3   :  { %18 = dma.hbm_to_vmem [thread:$0]  %s14_s8, 128, %s16_s10, [#allocation3]  }
   0x4   :  { %93 = dma.done.wait [#allocation3], 128  }
   0x5   :  { %94 = vsyncadd [#allocation3], 4294967168  ;;  %s98_s11 = smov [#allocation5]   ;;  %s33_s15 = sshll.u32 %s116_s1, 4  ;;  %vm24_vm0 = vcmask 121856   ;;  %v23_v0 = vld [vmem:[#allocation2] sm:$0xff]  ;;  %s34_s15 = int_to_ptr.hbm [resolvable:$true] %s33_s15 }
   0x6   :  { %s31_s12 = sshll.u32 %s98_s11, 4  ;;  %25 = vst.msk [vmem:[#allocation5] sm:$0xff] %vm24_vm0, %v23_v0  ;;  %s32_s12 = int_to_ptr.vmem [resolvable:$true] %s31_s12 }
   0x7   :  { %36 = dma.vmem_to_hbm [thread:$0]  %s32_s12, 128, %s34_s15, [#allocation4]  }
   0x8   :  { %95 = dma.done.wait [#allocation4], 128  }
   0x9   :  { %96 = vsyncadd [#allocation4], 4294967168 }
   0xa   :  { %41 = vsyncpa [#allocation3], 1 }
   0xb   :  { %42 = vsyncpa [#allocation4], 1 }

</bundles_post_ra>
